<compile_context>
chip_gen: v7x
topology: tpu7x:2x2x1
jax: 0.10.0
libtpu: 0.0.40
codegen_flags: <defaults>
</compile_context>

<pallas_src>
import functools

import numpy as np

import jax
import jax.numpy as jnp
from jax.experimental import pallas as pl
from jax.experimental.pallas import tpu as pltpu


_MIB = 1024 * 1024


def _round_up(x, m):
    return (x + m - 1) // m * m


def _sublane_pack(itemsize):
    # Sublane packing factor: f32 -> 8, bf16/f16 -> 16, int8/fp8 -> 32.
    return max(8, 32 // itemsize)


def _selection_matrix(W, dtype):
    """Q[l, w2*Wo + j] = 1 iff l == 2*j + w2 (lane de-interleave matrix).

    Applied to the even-H half of a row pair it yields planes k=0,1
    (columns [0,Wo) / [Wo,2Wo)); applied to the odd-H half, planes k=2,3.
    """
    Wo = W // 2
    q = np.zeros((W, 2 * Wo), np.float32)
    j = np.arange(Wo)
    q[2 * j, j] = 1.0           # w2 = 0 -> columns [0, Wo)
    q[2 * j + 1, Wo + j] = 1.0  # w2 = 1 -> columns [Wo, 2Wo)
    return jnp.asarray(q, dtype=dtype)


def _squeeze_fwd_kernel(x_ref, q_ref, o_ref, *, tbc, ho, wo, w,
                        compute_dtype, precision):
    # x_ref: (tbc, Ho, 2W)   rows = [x[.., 2*ho, :] | x[.., 2*ho + 1, :]]
    # q_ref: (W, 2*Wo)       constant 0/1 lane-compaction matrix
    # o_ref: (tbc, 4, Ho, Wo)
    if tbc > 1:
        rows = x_ref[...].reshape(tbc * ho, 2 * w)  # trivial: ho % pack == 0
    else:
        rows = x_ref[0]
    if rows.dtype != compute_dtype:
        rows = rows.astype(compute_dtype)
    q = q_ref[...]

    even = rows[:, :w]   # h2 = 0 source rows
    odd = rows[:, w:]    # h2 = 1 source rows
    # One fused (M, W) x (W, 2*Wo) dot per half; LHS streams through the MXU
    # once per half, results come out lane-concatenated per w2 parity.
    pe = jnp.dot(even, q, preferred_element_type=jnp.float32,
                 precision=precision)
    po = jnp.dot(odd, q, preferred_element_type=jnp.float32,
                 precision=precision)

    def store(k, plane):
        # plane: (tbc*Ho, Wo) f32; reshape while still f32 (needs ho % 8 == 0),
        # then cast to the output dtype.
        if tbc > 1:
            o_ref[:, k, :, :] = plane.reshape(tbc, ho, wo).astype(o_ref.dtype)
        else:
            o_ref[0, k, :, :] = plane.astype(o_ref.dtype)

    store(0, pe[:, :wo])   # k = 0: h2 = 0, w2 = 0
    store(1, pe[:, wo:])   # k = 1: h2 = 0, w2 = 1
    store(2, po[:, :wo])   # k = 2: h2 = 1, w2 = 0
    store(3, po[:, wo:])   # k = 3: h2 = 1, w2 = 1


def _pick_tbc(bc, ho, wo, itemsize, max_block_bytes, keep_two_steps):
    """Planes per grid step: biggest divisor of bc whose padded in+out block
    fits the budget; optionally keep >= 2 grid steps (dual-TC chips only)."""
    pack = _sublane_pack(itemsize)
    if ho % pack != 0:
        # The in-kernel (tbc, Ho, .) <-> (tbc*Ho, .) reshapes are only
        # layout-trivial when Ho is a multiple of the sublane packing.
        return 1
    in_bytes = _round_up(ho, pack) * _round_up(4 * wo, 128) * itemsize
    out_bytes = 4 * _round_up(ho, pack) * _round_up(wo, 128) * itemsize
    per_bc = in_bytes + out_bytes
    cap = max(1, min(bc, max_block_bytes // max(per_bc, 1)))
    if keep_two_steps and bc >= 2:
        cap = max(1, min(cap, bc // 2))
    for t in range(cap, 0, -1):
        if bc % t == 0:
            return t
    return 1


def _vmem_footprint_bytes(tbc, ho, wo, w, itemsize, q_itemsize):
    """Double-buffered in/out blocks + the resident selection matrix."""
    pack = _sublane_pack(itemsize)
    in_b = tbc * _round_up(ho, pack) * _round_up(2 * w, 128) * itemsize
    out_b = tbc * 4 * _round_up(ho, pack) * _round_up(wo, 128) * itemsize
    q_pack = _sublane_pack(q_itemsize)
    q_b = _round_up(w, q_pack) * _round_up(2 * wo, 128) * q_itemsize
    return 2 * (in_b + out_b + q_b)


def _is_dual_tensorcore():
    try:
        kind = jax.devices()[0].device_kind.lower()
    except Exception:
        return False
    return ("v7" in kind) or ("7x" in kind)


def squeeze_fwd(x, *, max_block_bytes=8 * _MIB):
    """Forward (rev=False) of Squeeze: (B, C, H, W) -> (B, 4C, H/2, W/2)."""
    B, C, H, W = x.shape
    assert H % 2 == 0 and W % 2 == 0, "spatial dims must be even"
    Ho, Wo = H // 2, W // 2
    BC = B * C

    # dtype-dependent compute path (see header comment).
    if x.dtype == jnp.bfloat16:
        compute_dtype = jnp.bfloat16
        q_dtype = jnp.bfloat16
        precision = jax.lax.Precision.DEFAULT
    else:
        compute_dtype = jnp.float32
        q_dtype = jnp.float32
        precision = jax.lax.Precision.HIGHEST

    # Free contiguous views only (no data movement in the wrapper).
    x3 = x.reshape(BC, Ho, 2 * W)
    q = _selection_matrix(W, q_dtype)

    tbc = _pick_tbc(BC, Ho, Wo, x.dtype.itemsize, max_block_bytes,
                    keep_two_steps=_is_dual_tensorcore())
    grid = (BC // tbc,)

    footprint = _vmem_footprint_bytes(tbc, Ho, Wo, W, x.dtype.itemsize,
                                      q.dtype.itemsize)
    vmem_limit = int(max(32 * _MIB, footprint + 4 * _MIB))

    kernel = functools.partial(_squeeze_fwd_kernel, tbc=tbc, ho=Ho, wo=Wo,
                               w=W, compute_dtype=compute_dtype,
                               precision=precision)
    out = pl.pallas_call(
        kernel,
        out_shape=jax.ShapeDtypeStruct((BC, 4, Ho, Wo), x.dtype),
        grid=grid,
        in_specs=[
            pl.BlockSpec((tbc, Ho, 2 * W), lambda i: (i, 0, 0)),
            pl.BlockSpec((W, 2 * Wo), lambda i: (0, 0)),
        ],
        out_specs=pl.BlockSpec((tbc, 4, Ho, Wo), lambda i: (i, 0, 0, 0)),
        compiler_params=pltpu.CompilerParams(
            dimension_semantics=("parallel",),
            vmem_limit_bytes=vmem_limit,
        ),
    )(x3, q)

    return out.reshape(B, 4 * C, Ho, Wo)


def squeeze_module_forward(xs, rev=False):
    """Mirrors Squeeze.forward(x, rev): takes/returns a list of tensors."""
    if not rev:
        return [squeeze_fwd(xs[0])]
    # TODO(synk): rev=True (depth-to-space inverse) not implemented.
    raise NotImplementedError("Squeeze rev=True not implemented in Pallas")


def _reference_fwd(x):
    """Pure-JAX exact reference mirroring the PyTorch module (rev=False)."""
    B, C, H, W = x.shape
    return (x.reshape(B, C, H // 2, 2, W // 2, 2)
             .transpose(0, 1, 3, 5, 2, 4)
             .reshape(B, 4 * C, H // 2, W // 2))


if __name__ == "__main__":
    key = jax.random.PRNGKey(0)
    B, C, H, W = 2, 4, 16, 16
    x = jax.random.normal(key, (B, C, H, W), dtype=jnp.float32)

    # f32 exact path.
    out = jax.block_until_ready(squeeze_fwd(x))
    ref = jax.block_until_ready(_reference_fwd(x))
    assert out.shape == (B, 4 * C, H // 2, W // 2), out.shape
    assert jnp.allclose(out, ref, atol=1e-6, rtol=1e-6), "f32 mismatch"

    # bf16 fast path (single DEFAULT-precision MXU pass, no upcast).
    xb = x.astype(jnp.bfloat16)
    outb = jax.block_until_ready(squeeze_fwd(xb))
    refb = jax.block_until_ready(_reference_fwd(xb))
    assert outb.dtype == jnp.bfloat16
    assert jnp.allclose(outb.astype(jnp.float32), refb.astype(jnp.float32),
                        atol=1e-6, rtol=1e-6), "bf16 mismatch"

    print("KERNEL_OK")
</pallas_src>

<mosaic_0001>
module attributes {stable_mosaic.version = 11 : i64} {
  func.func @_squeeze_fwd_kernel(%arg0: i32, %arg1: memref<8x8x32xf32, #tpu.memory_space<vmem>>, %arg2: memref<16x16xf32, #tpu.memory_space<vmem>>, %arg3: memref<8x4x8x8xf32, #tpu.memory_space<vmem>>) attributes {dimension_semantics = [#tpu.dimension_semantics<parallel>], iteration_bounds = array<i64: 1>, scalar_prefetch = 0 : i64, scratch_operands = 0 : i64, tpu.core_type = #tpu.core_type<tc>, window_params = [{transform_indices = @transform_0, window_bounds = array<i64: 8, 8, 32>}, {pipeline_mode = #tpu.pipeline_mode<synchronous>, transform_indices = @transform_1, window_bounds = array<i64: 16, 16>}, {transform_indices = @transform_2, window_bounds = array<i64: 8, 4, 8, 8>}]} {
    %c0 = arith.constant 0 : index
    %c0_0 = arith.constant 0 : index
    %c0_1 = arith.constant 0 : index
    %0 = vector.load %arg1[%c0, %c0_0, %c0_1] : memref<8x8x32xf32, #tpu.memory_space<vmem>>, vector<8x8x32xf32>
    %1 = vector.shape_cast %0 : vector<8x8x32xf32> to vector<64x32xf32>
    %c0_2 = arith.constant 0 : index
    %c0_3 = arith.constant 0 : index
    %2 = vector.load %arg2[%c0_2, %c0_3] : memref<16x16xf32, #tpu.memory_space<vmem>>, vector<16x16xf32>
    %3 = vector.extract_strided_slice %1 {offsets = [0, 0], sizes = [64, 16], strides = [1, 1]} : vector<64x32xf32> to vector<64x16xf32>
    %4 = vector.extract_strided_slice %1 {offsets = [0, 16], sizes = [64, 16], strides = [1, 1]} : vector<64x32xf32> to vector<64x16xf32>
    %cst = arith.constant dense<0.000000e+00> : vector<64x16xf32>
    %5 = tpu.matmul %3, %2, %cst {dimension_numbers = #tpu.dot_dimension_numbers<[1], [0], [0], [1], [0, 0, 1, 1], [], []>, precision = #tpu.contract_precision<fp32>} : vector<64x16xf32>, vector<16x16xf32>, vector<64x16xf32> -> vector<64x16xf32>
    %cst_4 = arith.constant dense<0.000000e+00> : vector<64x16xf32>
    %6 = tpu.matmul %4, %2, %cst_4 {dimension_numbers = #tpu.dot_dimension_numbers<[1], [0], [0], [1], [0, 0, 1, 1], [], []>, precision = #tpu.contract_precision<fp32>} : vector<64x16xf32>, vector<16x16xf32>, vector<64x16xf32> -> vector<64x16xf32>
    %7 = vector.extract_strided_slice %5 {offsets = [0, 0], sizes = [64, 8], strides = [1, 1]} : vector<64x16xf32> to vector<64x8xf32>
    %8 = vector.shape_cast %7 : vector<64x8xf32> to vector<8x8x8xf32>
    %c0_5 = arith.constant 0 : index
    %c0_6 = arith.constant 0 : index
    %c0_7 = arith.constant 0 : index
    %c0_8 = arith.constant 0 : index
    %9 = vector.load %arg3[%c0_5, %c0_6, %c0_7, %c0_8] : memref<8x4x8x8xf32, #tpu.memory_space<vmem>>, vector<8x1x8x8xf32>
    %10 = vector.shape_cast %9 : vector<8x1x8x8xf32> to vector<8x8x8xf32>
    %11 = vector.shape_cast %8 : vector<8x8x8xf32> to vector<8x1x8x8xf32>
    tpu.vector_store %arg3[%c0_5, %c0_6, %c0_7, %c0_8], %11 {strides = array<i32>} : memref<8x4x8x8xf32, #tpu.memory_space<vmem>>, vector<8x1x8x8xf32>,
    %12 = vector.extract_strided_slice %5 {offsets = [0, 8], sizes = [64, 8], strides = [1, 1]} : vector<64x16xf32> to vector<64x8xf32>
    %13 = vector.shape_cast %12 : vector<64x8xf32> to vector<8x8x8xf32>
    %c0_9 = arith.constant 0 : index
    %c1 = arith.constant 1 : index
    %c0_10 = arith.constant 0 : index
    %c0_11 = arith.constant 0 : index
    %14 = vector.load %arg3[%c0_9, %c1, %c0_10, %c0_11] : memref<8x4x8x8xf32, #tpu.memory_space<vmem>>, vector<8x1x8x8xf32>
    %15 = vector.shape_cast %14 : vector<8x1x8x8xf32> to vector<8x8x8xf32>
    %16 = vector.shape_cast %13 : vector<8x8x8xf32> to vector<8x1x8x8xf32>
    tpu.vector_store %arg3[%c0_9, %c1, %c0_10, %c0_11], %16 {strides = array<i32>} : memref<8x4x8x8xf32, #tpu.memory_space<vmem>>, vector<8x1x8x8xf32>,
    %17 = vector.extract_strided_slice %6 {offsets = [0, 0], sizes = [64, 8], strides = [1, 1]} : vector<64x16xf32> to vector<64x8xf32>
    %18 = vector.shape_cast %17 : vector<64x8xf32> to vector<8x8x8xf32>
    %c0_12 = arith.constant 0 : index
    %c2 = arith.constant 2 : index
    %c0_13 = arith.constant 0 : index
    %c0_14 = arith.constant 0 : index
    %19 = vector.load %arg3[%c0_12, %c2, %c0_13, %c0_14] : memref<8x4x8x8xf32, #tpu.memory_space<vmem>>, vector<8x1x8x8xf32>
    %20 = vector.shape_cast %19 : vector<8x1x8x8xf32> to vector<8x8x8xf32>
    %21 = vector.shape_cast %18 : vector<8x8x8xf32> to vector<8x1x8x8xf32>
    tpu.vector_store %arg3[%c0_12, %c2, %c0_13, %c0_14], %21 {strides = array<i32>} : memref<8x4x8x8xf32, #tpu.memory_space<vmem>>, vector<8x1x8x8xf32>,
    %22 = vector.extract_strided_slice %6 {offsets = [0, 8], sizes = [64, 8], strides = [1, 1]} : vector<64x16xf32> to vector<64x8xf32>
    %23 = vector.shape_cast %22 : vector<64x8xf32> to vector<8x8x8xf32>
    %c0_15 = arith.constant 0 : index
    %c3 = arith.constant 3 : index
    %c0_16 = arith.constant 0 : index
    %c0_17 = arith.constant 0 : index
    %24 = vector.load %arg3[%c0_15, %c3, %c0_16, %c0_17] : memref<8x4x8x8xf32, #tpu.memory_space<vmem>>, vector<8x1x8x8xf32>
    %25 = vector.shape_cast %24 : vector<8x1x8x8xf32> to vector<8x8x8xf32>
    %26 = vector.shape_cast %23 : vector<8x8x8xf32> to vector<8x1x8x8xf32>
    tpu.vector_store %arg3[%c0_15, %c3, %c0_16, %c0_17], %26 {strides = array<i32>} : memref<8x4x8x8xf32, #tpu.memory_space<vmem>>, vector<8x1x8x8xf32>,
    return
  }
  func.func @transform_0(%arg0: i32) -> (i32, i32, i32) {
    %c0_i32 = arith.constant 0 : i32
    %c0_i32_0 = arith.constant 0 : i32
    %c0_i32_1 = arith.constant 0 : i32
    return %arg0, %c0_i32, %c0_i32_0 : i32, i32, i32
  }
  func.func @transform_1(%arg0: i32) -> (i32, i32) {
    %c0_i32 = arith.constant 0 : i32
    %c0_i32_0 = arith.constant 0 : i32
    %c0_i32_1 = arith.constant 0 : i32
    return %c0_i32, %c0_i32_0 : i32, i32
  }
  func.func @transform_2(%arg0: i32) -> (i32, i32, i32, i32) {
    %c0_i32 = arith.constant 0 : i32
    %c0_i32_0 = arith.constant 0 : i32
    %c0_i32_1 = arith.constant 0 : i32
    %c0_i32_2 = arith.constant 0 : i32
    return %arg0, %c0_i32, %c0_i32_0, %c0_i32_1 : i32, i32, i32, i32
  }
}

</mosaic_0001>

<bundles_post_ra>
// kernel: tpu_custom_call.1
= control target key start
LH: loop header
LB: loop body
LE: loop exit
PB: predicated region body
PF: predicated region fallthrough
CT: control target
= control target key end

     0   :  { %7 = vsyncpa [#allocation3], 0  ;;  %s2641_s0 = inlined_call_operand.hbm [shape: f32[8,8,32], index: 0, kind: input, shape index: {}]   ;;  %s2642_s1 = inlined_call_operand.hbm [shape: f32[16,16], index: 1, kind: input, shape index: {}]   ;;  %s2643_s2 = inlined_call_operand.hbm [shape: f32[8,4,8,8], index: 2, kind: output, shape index: {}]  }
   0x1   :  { %8 = vsyncpa [#allocation6], 0 }
   0x2   :  { %9 = vsyncpa [#allocation4], 0  ;;  %s2264_s9 = smov [#allocation2]   ;;  %s2192_s13 = scalar_lea.hbm %s2641_s0, 1024 }
   0x3   :  { %s15_s10 = sshll.u32 %s2264_s9, 4  ;;  %p2193_p0 = scmp.ne.s32.totalorder %s2641_s0, %s2192_s13  ;;  %s16_s10 = int_to_ptr.vmem [resolvable:$true] %s15_s10 }
   0x4   :  { %p2196_p1 = scmp.lt.u32.totalorder %s2192_s13, %s2641_s0 }
   0x6   :  { %p2198_p2 = pnand %p2196_p1, %p2193_p0 }
   0x8   :  { %2201 = shalt.err (!%p2198_p2)
}
   0x9   :  { %s2202_s18 = scalar_lea.vmem %s16_s10, 1024  ;;  %p2207_p4 = scmp.lt.s32.totalorder %s16_s10, %s16_s10 }
   0xa   :  { %p2203_p3 = scmp.ne.s32.totalorder %s16_s10, %s2202_s18  ;;  %p2208_p5 = scmp.lt.s32.totalorder %s2202_s18, %s2202_s18 }
   0xc   :  { %p2209_p6 = por %p2208_p5, %p2207_p4 }
   0xe   :  { %p2210_p7 = pnand %p2209_p6, %p2203_p3 }
  0x10   :  { %2213 = shalt.err (!%p2210_p7)
}
  0x11   :  { %s2265_s19 = smov 128   ;;  %s2266_s20 = smov 8  }
  0x12   :  { %21 = dma.hbm_to_vmem [thread:$0]  %s2641_s0, 1024, %s16_s10, [#allocation3], %s2265_s19, %s2265_s19, %s2266_s20  }
  0x13   :  { %s2267_s23 = smov [#allocation5]   ;;  %s2214_s27 = scalar_lea.hbm %s2642_s1, 256 }
  0x14   :  { %s27_s24 = sshll.u32 %s2267_s23, 4  ;;  %p2215_p8 = scmp.ne.s32.totalorder %s2642_s1, %s2214_s27  ;;  %s28_s24 = int_to_ptr.vmem [resolvable:$true] %s27_s24 }
  0x15   :  { %p2218_p9 = scmp.lt.u32.totalorder %s2214_s27, %s2642_s1 }
  0x17   :  { %p2220_p10 = pnand %p2218_p9, %p2215_p8 }
  0x19   :  { %2223 = shalt.err (!%p2220_p10)
}
  0x1a   :  { %s2224_s4 = scalar_lea.vmem %s28_s24, 256  ;;  %p2229_p12 = scmp.lt.s32.totalorder %s28_s24, %s28_s24 }
  0x1b   :  { %p2225_p11 = scmp.ne.s32.totalorder %s28_s24, %s2224_s4  ;;  %p2230_p13 = scmp.lt.s32.totalorder %s2224_s4, %s2224_s4 }
  0x1d   :  { %p2231_p0 = por %p2230_p13, %p2229_p12 }
  0x1f   :  { %p2232_p1 = pnand %p2231_p0, %p2225_p11 }
  0x21   :  { %2235 = shalt.err (!%p2232_p1)
}
  0x22   :  { %33 = dma.hbm_to_vmem [thread:$0]  %s2642_s1, 256, %s28_s24, [#allocation6], %s2265_s19, %s2265_s19, %s2266_s20  }
  0x23   :  { %2258 = dma.done.wait [#allocation3], 1024  }
  0x24   :  { %2259 = vsyncadd [#allocation3], 4294966272 }
  0x25   :  { %2260 = dma.done.wait [#allocation6], 256  }
  0x26   :  { %2261 = vsyncadd [#allocation6], 4294967040  ;;  %vm50_vm0 = vcmask 130048   ;;  %v42_v0 = vld [vmem:[#allocation2 + $0x10] sm:$0xff]  ;;  %v40_v1 = vld [vmem:[#allocation2] sm:$0xff]  ;;  %s2268_s6 = smov 112  }
  0x27   :  { %v43_v2 = vld [vmem:[#allocation2 + $0x18] sm:$0xff]  ;;  %839 = vrot.lane.b32.xlu1 %v42_v0, %s2268_s6  ;;  %v58_v3 = vsel %vm50_vm0, %v42_v0, 0  ;;  %835 = vrot.lane.b32.xlu0 %v40_v1, %s2268_s6  ;;  %v52_v4 = vsel %vm50_vm0, %v40_v1, 0  ;;  %v41_v6 = vld [vmem:[#allocation2 + $0x8] sm:$0xff]  ;;  %v44_v12 = vld [vmem:[#allocation2 + $0x20] sm:$0xff]  ;;  %vm1627_vm1 = vcmask 64512  }
  0x28   :  { %v61_v5 = vsel %vm50_vm0, %v43_v2, 0  ;;  %v45_v7 = vld [vmem:[#allocation2 + $0x28] sm:$0xff]  ;;  %v2321_v8 = vand.u32 4294901760, %v58_v3  ;;  %v2323_v9 = vand.u32 4294901760, %v52_v4  ;;  %v55_v11 = vsel %vm50_vm0, %v41_v6, 0  ;;  %v47_v13 = vld [vmem:[#allocation2 + $0x38] sm:$0xff] }
  0x29   :  { %v2325_v10 = vand.u32 4294901760, %v61_v5  ;;  %v2328_v14 = vand.u32 4294901760, %v55_v11  ;;  %v67_v15 = vsel %vm50_vm0, %v45_v7, 0  ;;  %v64_v16 = vsel %vm50_vm0, %v44_v12, 0  ;;  %v48_v18 = vld [vmem:[#allocation5] sm:$0xff]  ;;  %v49_v19 = vld [vmem:[#allocation5 + $0x8] sm:$0xff] }
  0x2a   :  { %v73_v17 = vsel %vm50_vm0, %v47_v13, 0  ;;  %v2334_v20 = vsub.f32 %v58_v3, %v2321_v8  ;;  %v2337_v21 = vsub.f32 %v52_v4, %v2323_v9  ;;  %v2342_v23 = vand.u32 4294901760, %v67_v15  ;;  %v46_v24 = vld [vmem:[#allocation2 + $0x30] sm:$0xff]  ;;  %s2269_s1 = smov 120   ;;  %s2270_s7 = smov [#allocation7]  }
  0x2b   :  { %v2340_v22 = vsub.f32 %v61_v5, %v2325_v10  ;;  %841 = vrot.lane.b32.xlu1 %v43_v2, %s2268_s6  ;;  %v2346_v25 = vsub.f32 %v55_v11, %v2328_v14  ;;  %837 = vrot.lane.b32.xlu0 %v41_v6, %s2268_s6  ;;  %v2349_v26 = vand.u32 4294901760, %v64_v16  ;;  %v70_v27 = vsel %vm50_vm0, %v46_v24, 0  ;;  %s1732_s8 = sshll.u32 %s2270_s7, 4  ;;  %s1733_s8 = int_to_ptr.vmem [resolvable:$true] %s1732_s8 }
  0x2c   :  { %v2352_v28 = vand.u32 4294901760, %v73_v17  ;;  %v2354_v29 = vand.u32 4294901760, %v70_v27  ;;  %v76_v30 = vand.u32 4294901760, %v48_v18  ;;  %v79_v31 = vand.u32 4294901760, %v49_v19  ;;  %s2236_s9 = scalar_lea.vmem %s1733_s8, 4096  ;;  %p2241_p3 = scmp.lt.s32.totalorder %s1733_s8, %s1733_s8 }
  0x2d   :  { %v2357_v32 = vsub.f32 %v67_v15, %v2342_v23  ;;  %v2360_v33 = vsub.f32 %v64_v16, %v2349_v26  ;;  %v144_v34 = vand.u32 4294901760, %v2337_v21  ;;  %v154_v35 = vand.u32 4294901760, %v2346_v25  ;;  %p2237_p2 = scmp.ne.s32.totalorder %s1733_s8, %s2236_s9  ;;  %p2242_p4 = scmp.lt.s32.totalorder %s2236_s9, %s2236_s9 }
  0x2e   :  { %v2365_v36 = vsub.f32 %v70_v27, %v2354_v29  ;;  %v2367_v37 = vpack.c.bf16 %v79_v31, %v76_v30  ;;  %v164_v38 = vand.u32 4294901760, %v2334_v20  ;;  %v174_v39 = vand.u32 4294901760, %v2340_v22 }
  0x2f   :  { %845 = vrot.lane.b32.xlu1 %v45_v7, %s2268_s6  ;;  %843 = vrot.lane.b32.xlu0 %v44_v12, %s2268_s6  ;;  %v145_v40 = vsub.f32 %v2337_v21, %v144_v34  ;;  %v155_v41 = vsub.f32 %v2346_v25, %v154_v35  ;;  %v184_v42 = vand.u32 4294901760, %v2360_v33  ;;  %v2381_v43 = vsub.f32 %v73_v17, %v2352_v28  ;;  %p2243_p5 = por %p2242_p4, %p2241_p3 }
  0x30   :  { %2058 = vmatprep.subr.bf16.mxu0 %v2367_v37  ;;  %v165_v44 = vsub.f32 %v2334_v20, %v164_v38  ;;  %2082 = vmatprep.subr.bf16.mxu1 %v2367_v37  ;;  %v175_v47 = vsub.f32 %v2340_v22, %v174_v39  ;;  %v194_v48 = vand.u32 4294901760, %v2357_v32  ;;  %v204_v51 = vand.u32 4294901760, %v2365_v36 }
  0x31   :  { %2060 = vmatpush3.bf16.msra.mxu0 %v2367_v37  ;;  %v146_v45 = vand.u32 4294901760, %v145_v40  ;;  %v156_v46 = vand.u32 4294901760, %v155_v41  ;;  %2084 = vmatpush3.bf16.msra.mxu1 %v2367_v37  ;;  %v185_v50 = vsub.f32 %v2360_v33, %v184_v42  ;;  %v224_v52 = vsub.f32 %v48_v18, %v76_v30  ;;  %p2244_p6 = pnand %p2243_p5, %p2237_p2 }
  0x32   :  { %v166_v49 = vand.u32 4294901760, %v165_v44  ;;  %v231_v53 = vsub.f32 %v49_v19, %v79_v31  ;;  %v214_v54 = vand.u32 4294901760, %v2381_v43  ;;  %v176_v55 = vand.u32 4294901760, %v175_v47 }
  0x33   :  { %849 = vrot.lane.b32.xlu1 %v47_v13, %s2268_s6  ;;  %847 = vrot.lane.b32.xlu0 %v46_v24, %s2268_s6  ;;  %v195_v56 = vsub.f32 %v2357_v32, %v194_v48  ;;  %v225_v57 = vand.u32 4294901760, %v224_v52  ;;  %v186_v59 = vand.u32 4294901760, %v185_v50  ;;  %v205_v60 = vsub.f32 %v2365_v36, %v204_v51 }
  0x34   :  { %1869 = vmatprep.mubr.f32.mxu0 %v146_v45  ;;  %v232_v58 = vand.u32 4294901760, %v231_v53  ;;  %v215_v0 = vsub.f32 %v2381_v43, %v214_v54  ;;  %v2408_v5 = vpack.c.bf16 %v231_v53, %v224_v52 }
  0x35   :  { %1870 = vmatmul.mubr.f32.vlgmr.msra.gmra.mrb[0].mxu0 %v156_v46  ;;  %v226_v61 = vsub.f32 %v224_v52, %v225_v57  ;;  %v196_v63 = vand.u32 4294901760, %v195_v56  ;;  %v206_v3 = vand.u32 4294901760, %v205_v60 }
  0x36   :  { %1872 = vmatprep.mubr.f32.mxu0 %v166_v49  ;;  %v233_v62 = vsub.f32 %v231_v53, %v232_v58  ;;  %v216_v6 = vand.u32 4294901760, %v215_v0  ;;  %v2425_v7 = vpack.c.bf16 %v232_v58, %v225_v57 }
  0x37   :  { %v227_v1 = vand.u32 4294901760, %v226_v61 }
  0x38   :  { %v234_v2 = vand.u32 4294901760, %v233_v62 }
  0x39   :  { %1873 = vmatmul.mubr.f32.gmra.mrb[2].mxu0 %v176_v55 }
  0x3a   :  { %1875 = vmatprep.mubr.f32.mxu0 %v186_v59  ;;  %v2406_v4 = vpack.c.bf16 %v234_v2, %v227_v1 }
  0x3c   :  { %2062 = vmatprep.subr.bf16.mxu0 %v2406_v4  ;;  %2086 = vmatprep.subr.bf16.mxu1 %v2406_v4 }
  0x3d   :  { %1876 = vmatmul.mubr.f32.gmra.mrb[4].mxu0 %v196_v63 }
  0x3e   :  { %1878 = vmatprep.mubr.f32.mxu0 %v206_v3  ;;  %2064 = vmatpush3.bf16.msra.mxu0 %v2406_v4 }
  0x3f   :  { %2066 = vmatprep.subr.bf16.mxu0 %v2408_v5 }
  0x41   :  { %1879 = vmatmul.mubr.f32.gmra.mrb[6].mxu0 %v216_v6 }
  0x42   :  { %1885 = vmatprep.mubr.f32.mxu0 %v2323_v9 }
  0x45   :  { %1886 = vmatmul.mubr.f32.vlgmr.msra.gmra.mrb[0].mxu0 %v2328_v14 }
  0x46   :  { %1888 = vmatprep.mubr.f32.mxu0 %v2321_v8  ;;  %2068 = vmatpush3.bf16.msra.mxu0 %v2408_v5 }
  0x47   :  { %2070 = vmatprep.subr.bf16.mxu0 %v2367_v37 }
  0x49   :  { %1889 = vmatmul.mubr.f32.gmra.mrb[2].mxu0 %v2325_v10 }
  0x4a   :  { %1891 = vmatprep.mubr.f32.mxu0 %v2349_v26 }
  0x4d   :  { %1892 = vmatmul.mubr.f32.gmra.mrb[4].mxu0 %v2342_v23 }
  0x4e   :  { %1894 = vmatprep.mubr.f32.mxu0 %v2354_v29 }
  0x51   :  { %1895 = vmatmul.mubr.f32.gmra.mrb[6].mxu0 %v2352_v28 }
  0x52   :  { %1901 = vmatprep.mubr.f32.mxu0 %v2337_v21 }
  0x55   :  { %1902 = vmatmul.mubr.f32.vlgmr.msra.gmra.mrb[0].mxu0 %v2346_v25 }
  0x56   :  { %1904 = vmatprep.mubr.f32.mxu0 %v2334_v20  ;;  %2072 = vmatpush3.bf16.msra.mxu0 %v2367_v37 }
  0x57   :  { %2074 = vmatprep.subr.bf16.mxu0 %v2425_v7 }
  0x59   :  { %1905 = vmatmul.mubr.f32.gmra.mrb[2].mxu0 %v2340_v22 }
  0x5a   :  { %1907 = vmatprep.mubr.f32.mxu0 %v2360_v33 }
  0x5d   :  { %1908 = vmatmul.mubr.f32.gmra.mrb[4].mxu0 %v2357_v32 }
  0x5e   :  { %1910 = vmatprep.mubr.f32.mxu0 %v2365_v36 }
  0x61   :  { %1911 = vmatmul.mubr.f32.gmra.mrb[6].mxu0 %v2381_v43 }
  0x62   :  { %1917 = vmatprep.mubr.f32.mxu0 %v144_v34 }
  0x65   :  { %1918 = vmatmul.mubr.f32.vlgmr.msra.gmra.mrb[0].mxu0 %v154_v35 }
  0x66   :  { %1920 = vmatprep.mubr.f32.mxu0 %v164_v38  ;;  %2076 = vmatpush3.bf16.msra.mxu0 %v2425_v7 }
  0x67   :  { %2078 = vmatprep.subr.bf16.mxu0 %v2367_v37 }
  0x69   :  { %1921 = vmatmul.mubr.f32.gmra.mrb[2].mxu0 %v174_v39 }
  0x6a   :  { %1923 = vmatprep.mubr.f32.mxu0 %v184_v42 }
  0x6d   :  { %1924 = vmatmul.mubr.f32.gmra.mrb[4].mxu0 %v194_v48 }
  0x6e   :  { %1926 = vmatprep.mubr.f32.mxu0 %v204_v51 }
  0x71   :  { %1927 = vmatmul.mubr.f32.gmra.mrb[6].mxu0 %v214_v54 }
  0x72   :  { %1933 = vmatprep.mubr.f32.mxu0 %v2323_v9 }
  0x75   :  { %1934 = vmatmul.mubr.f32.vlgmr.msra.gmra.mrb[0].mxu0 %v2328_v14 }
  0x76   :  { %1936 = vmatprep.mubr.f32.mxu0 %v2321_v8  ;;  %2080 = vmatpush3.bf16.msra.mxu0 %v2367_v37 }
  0x79   :  { %1937 = vmatmul.mubr.f32.gmra.mrb[2].mxu0 %v2325_v10 }
  0x7a   :  { %1939 = vmatprep.mubr.f32.mxu0 %v2349_v26 }
  0x7d   :  { %1940 = vmatmul.mubr.f32.gmra.mrb[4].mxu0 %v2342_v23 }
  0x7e   :  { %1942 = vmatprep.mubr.f32.mxu0 %v2354_v29 }
  0x81   :  { %1943 = vmatmul.mubr.f32.gmra.mrb[6].mxu0 %v2352_v28 }
  0x82   :  { %1949 = vmatprep.mubr.f32.mxu0 %v2323_v9 }
  0x85   :  { %1950 = vmatmul.mubr.f32.vlgmr.msra.gmra.mrb[0].mxu0 %v2328_v14 }
  0x86   :  { %1952 = vmatprep.mubr.f32.mxu0 %v2321_v8 }
  0x89   :  { %1953 = vmatmul.mubr.f32.gmra.mrb[2].mxu0 %v2325_v10 }
  0x8a   :  { %1955 = vmatprep.mubr.f32.mxu0 %v2349_v26 }
  0x8d   :  { %1956 = vmatmul.mubr.f32.gmra.mrb[4].mxu0 %v2342_v23 }
  0x8e   :  { %1958 = vmatprep.mubr.f32.mxu0 %v2354_v29 }
  0x91   :  { %1959 = vmatmul.mubr.f32.gmra.mrb[6].mxu0 %v2352_v28 }
  0x99   :  { %v840_v11 = vpop.permute.xlu1 %839  ;;  %v836_v12 = vpop.permute.xlu0 %835 }
  0x9a   :  { %v855_v13 = vsel %vm50_vm0, %v840_v11, 0  ;;  %v851_v9 = vsel %vm50_vm0, %v836_v12, 0 }
  0x9b   :  { %v2469_v15 = vand.u32 4294901760, %v855_v13  ;;  %v2471_v14 = vand.u32 4294901760, %v851_v9 }
  0x9d   :  { %v2474_v8 = vsub.f32 %v855_v13, %v2469_v15  ;;  %v2477_v10 = vsub.f32 %v851_v9, %v2471_v14  ;;  %v842_v16 = vpop.permute.xlu1 %841  ;;  %v838_v17 = vpop.permute.xlu0 %837 }
  0x9e   :  { %v857_v18 = vsel %vm50_vm0, %v842_v16, 0  ;;  %v853_v19 = vsel %vm50_vm0, %v838_v17, 0 }
  0x9f   :  { %v2481_v20 = vand.u32 4294901760, %v857_v18  ;;  %v2483_v21 = vand.u32 4294901760, %v853_v19  ;;  %v936_v22 = vand.u32 4294901760, %v2477_v10  ;;  %v956_v23 = vand.u32 4294901760, %v2474_v8 }
  0xa1   :  { %v2488_v24 = vsub.f32 %v857_v18, %v2481_v20  ;;  %v2491_v25 = vsub.f32 %v853_v19, %v2483_v21  ;;  %v846_v26 = vpop.permute.xlu1 %845  ;;  %v844_v27 = vpop.permute.xlu0 %843  ;;  %v937_v28 = vsub.f32 %v2477_v10, %v936_v22  ;;  %v957_v42 = vsub.f32 %v2474_v8, %v956_v23 }
  0xa2   :  { %v861_v29 = vsel %vm50_vm0, %v846_v26, 0  ;;  %v859_v30 = vsel %vm50_vm0, %v844_v27, 0 }
  0xa3   :  { %v946_v31 = vand.u32 4294901760, %v2491_v25  ;;  %v2499_v32 = vand.u32 4294901760, %v861_v29  ;;  %v2501_v33 = vand.u32 4294901760, %v859_v30  ;;  %v966_v34 = vand.u32 4294901760, %v2488_v24 }
  0xa4   :  { %v938_v35 = vand.u32 4294901760, %v937_v28  ;;  %v958_v53 = vand.u32 4294901760, %v957_v42 }
  0xa5   :  { %v2505_v36 = vsub.f32 %v861_v29, %v2499_v32  ;;  %v2508_v38 = vsub.f32 %v859_v30, %v2501_v33  ;;  %v850_v39 = vpop.permute.xlu1 %849  ;;  %v848_v40 = vpop.permute.xlu0 %847  ;;  %v947_v41 = vsub.f32 %v2491_v25, %v946_v31  ;;  %v967_v50 = vsub.f32 %v2488_v24, %v966_v34 }
  0xa6   :  { %v865_v43 = vsel %vm50_vm0, %v850_v39, 0  ;;  %1965 = vmatprep.mubr.f32.mxu1 %v938_v35  ;;  %v863_v44 = vsel %vm50_vm0, %v848_v40, 0 }
  0xa7   :  { %v976_v45 = vand.u32 4294901760, %v2508_v38  ;;  %v2519_v46 = vand.u32 4294901760, %v865_v43  ;;  %v2521_v47 = vand.u32 4294901760, %v863_v44  ;;  %v986_v48 = vand.u32 4294901760, %v2505_v36 }
  0xa8   :  { %v948_v49 = vand.u32 4294901760, %v947_v41  ;;  %v968_v58 = vand.u32 4294901760, %v967_v50 }
  0xa9   :  { %v1005_v51 = vsub.f32 %v865_v43, %v2519_v46  ;;  %v995_v52 = vsub.f32 %v863_v44, %v2521_v47  ;;  %v977_v54 = vsub.f32 %v2508_v38, %v976_v45  ;;  %v987_v59 = vsub.f32 %v2505_v36, %v986_v48 }
  0xaa   :  { %1966 = vmatmul.mubr.f32.vlgmr.msra.gmra.mrb[0].mxu1 %v948_v49 }
  0xab   :  { %v996_v55 = vand.u32 4294901760, %v995_v52  ;;  %2088 = vmatpush3.bf16.msra.mxu1 %v2406_v4  ;;  %1968 = vmatprep.mubr.f32.mxu1 %v958_v53  ;;  %v978_v56 = vand.u32 4294901760, %v977_v54  ;;  %v1006_v57 = vand.u32 4294901760, %v1005_v51  ;;  %v988_v62 = vand.u32 4294901760, %v987_v59 }
  0xac   :  { %2090 = vmatprep.subr.bf16.mxu1 %v2408_v5 }
  0xad   :  { %v997_v60 = vsub.f32 %v995_v52, %v996_v55  ;;  %v1007_v63 = vsub.f32 %v1005_v51, %v1006_v57 }
  0xae   :  { %1969 = vmatmul.mubr.f32.gmra.mrb[2].mxu1 %v968_v58 }
  0xaf   :  { %1971 = vmatprep.mubr.f32.mxu1 %v978_v56  ;;  %v998_v61 = vand.u32 4294901760, %v997_v60  ;;  %v1008_v0 = vand.u32 4294901760, %v1007_v63 }
  0xb2   :  { %1972 = vmatmul.mubr.f32.gmra.mrb[4].mxu1 %v988_v62 }
  0xb3   :  { %1974 = vmatprep.mubr.f32.mxu1 %v998_v61 }
  0xb6   :  { %1975 = vmatmul.mubr.f32.gmra.mrb[6].mxu1 %v1008_v0 }
  0xb7   :  { %1981 = vmatprep.mubr.f32.mxu1 %v2471_v14 }
  0xba   :  { %1982 = vmatmul.mubr.f32.vlgmr.msra.gmra.mrb[0].mxu1 %v2483_v21 }
  0xbb   :  { %2092 = vmatpush3.bf16.msra.mxu1 %v2408_v5  ;;  %1984 = vmatprep.mubr.f32.mxu1 %v2469_v15 }
  0xbc   :  { %2094 = vmatprep.subr.bf16.mxu1 %v2367_v37 }
  0xbe   :  { %1985 = vmatmul.mubr.f32.gmra.mrb[2].mxu1 %v2481_v20 }
  0xbf   :  { %1987 = vmatprep.mubr.f32.mxu1 %v2501_v33 }
  0xc2   :  { %1988 = vmatmul.mubr.f32.gmra.mrb[4].mxu1 %v2499_v32 }
  0xc3   :  { %1990 = vmatprep.mubr.f32.mxu1 %v2521_v47 }
  0xc6   :  { %1991 = vmatmul.mubr.f32.gmra.mrb[6].mxu1 %v2519_v46 }
  0xc7   :  { %1997 = vmatprep.mubr.f32.mxu1 %v2477_v10 }
  0xca   :  { %1998 = vmatmul.mubr.f32.vlgmr.msra.gmra.mrb[0].mxu1 %v2491_v25 }
  0xcb   :  { %2096 = vmatpush3.bf16.msra.mxu1 %v2367_v37  ;;  %2000 = vmatprep.mubr.f32.mxu1 %v2474_v8 }
  0xcc   :  { %2098 = vmatprep.subr.bf16.mxu1 %v2425_v7 }
  0xce   :  { %2001 = vmatmul.mubr.f32.gmra.mrb[2].mxu1 %v2488_v24 }
  0xcf   :  { %2003 = vmatprep.mubr.f32.mxu1 %v2508_v38 }
  0xd2   :  { %2004 = vmatmul.mubr.f32.gmra.mrb[4].mxu1 %v2505_v36 }
  0xd3   :  { %2006 = vmatprep.mubr.f32.mxu1 %v995_v52 }
  0xd6   :  { %2007 = vmatmul.mubr.f32.gmra.mrb[6].mxu1 %v1005_v51 }
  0xd7   :  { %2013 = vmatprep.mubr.f32.mxu1 %v936_v22 }
  0xda   :  { %2014 = vmatmul.mubr.f32.vlgmr.msra.gmra.mrb[0].mxu1 %v946_v31 }
  0xdb   :  { %2100 = vmatpush3.bf16.msra.mxu1 %v2425_v7  ;;  %2016 = vmatprep.mubr.f32.mxu1 %v956_v23 }
  0xdc   :  { %2102 = vmatprep.subr.bf16.mxu1 %v2367_v37 }
  0xde   :  { %2017 = vmatmul.mubr.f32.gmra.mrb[2].mxu1 %v966_v34 }
  0xdf   :  { %2019 = vmatprep.mubr.f32.mxu1 %v976_v45 }
  0xe2   :  { %2020 = vmatmul.mubr.f32.gmra.mrb[4].mxu1 %v986_v48 }
  0xe3   :  { %2022 = vmatprep.mubr.f32.mxu1 %v996_v55 }
  0xe6   :  { %2023 = vmatmul.mubr.f32.gmra.mrb[6].mxu1 %v1006_v57 }
  0xe7   :  { %2029 = vmatprep.mubr.f32.mxu1 %v2471_v14 }
  0xea   :  { %2030 = vmatmul.mubr.f32.vlgmr.msra.gmra.mrb[0].mxu1 %v2483_v21 }
  0xeb   :  { %2104 = vmatpush3.bf16.msra.mxu1 %v2367_v37  ;;  %2032 = vmatprep.mubr.f32.mxu1 %v2469_v15 }
  0xee   :  { %2033 = vmatmul.mubr.f32.gmra.mrb[2].mxu1 %v2481_v20 }
  0xef   :  { %2035 = vmatprep.mubr.f32.mxu1 %v2501_v33 }
  0xf2   :  { %2036 = vmatmul.mubr.f32.gmra.mrb[4].mxu1 %v2499_v32 }
  0xf3   :  { %2038 = vmatprep.mubr.f32.mxu1 %v2521_v47 }
  0xf6   :  { %2039 = vmatmul.mubr.f32.gmra.mrb[6].mxu1 %v2519_v46 }
  0xf7   :  { %2045 = vmatprep.mubr.f32.mxu1 %v2471_v14 }
  0xfa   :  { %2046 = vmatmul.mubr.f32.vlgmr.msra.gmra.mrb[0].mxu1 %v2483_v21 }
  0xfb   :  { %2048 = vmatprep.mubr.f32.mxu1 %v2469_v15 }
  0xfe   :  { %2049 = vmatmul.mubr.f32.gmra.mrb[2].mxu1 %v2481_v20 }
  0xff   :  { %2051 = vmatprep.mubr.f32.mxu1 %v2501_v33 }
 0x102   :  { %2052 = vmatmul.mubr.f32.gmra.mrb[4].mxu1 %v2499_v32 }
 0x103   :  { %2054 = vmatprep.mubr.f32.mxu1 %v2521_v47 }
 0x106   :  { %2055 = vmatmul.mubr.f32.gmra.mrb[6].mxu1 %v2519_v46 }
 0x158   :  { %v1951_v37 = vpop.f32.mrb[0].mxu0 }
 0x159   :  { %1629 = vst.msk [vmem:[#allocation7 + $0x20] sm:$0xff] %vm1627_vm1, %v1951_v37  ;;  %v789_v1 = vpop.f32.mrb[1].mxu0  ;;  %1646 = vrot.lane.b32.xlu1 %v1951_v37, %s2269_s1 }
 0x15a   :  { %1628 = vst.msk [vmem:[#allocation7] sm:$0xff] %vm1627_vm1, %v789_v1  ;;  %1644 = vrot.lane.b32.xlu0 %v789_v1, %s2269_s1 }
 0x15c   :  { %v1954_v2 = vpop.f32.mrb[2].mxu0 }
 0x15d   :  { %1631 = vst.msk [vmem:[#allocation7 + $0x60] sm:$0xff] %vm1627_vm1, %v1954_v2  ;;  %v801_v3 = vpop.f32.mrb[3].mxu0  ;;  %1650 = vrot.lane.b32.xlu1 %v1954_v2, %s2269_s1 }
 0x15e   :  { %1630 = vst.msk [vmem:[#allocation7 + $0x40] sm:$0xff] %vm1627_vm1, %v801_v3  ;;  %1648 = vrot.lane.b32.xlu0 %v801_v3, %s2269_s1 }
 0x160   :  { %v1957_v4 = vpop.f32.mrb[4].mxu0 }
 0x161   :  { %1633 = vst.msk [vmem:[#allocation7 + $0xa0] sm:$0xff] %vm1627_vm1, %v1957_v4  ;;  %v813_v5 = vpop.f32.mrb[5].mxu0  ;;  %1654 = vrot.lane.b32.xlu1 %v1957_v4, %s2269_s1 }
 0x162   :  { %1632 = vst.msk [vmem:[#allocation7 + $0x80] sm:$0xff] %vm1627_vm1, %v813_v5  ;;  %1652 = vrot.lane.b32.xlu0 %v813_v5, %s2269_s1 }
 0x164   :  { %v1960_v6 = vpop.f32.mrb[6].mxu0 }
 0x165   :  { %1635 = vst.msk [vmem:[#allocation7 + $0xe0] sm:$0xff] %vm1627_vm1, %v1960_v6  ;;  %v825_v7 = vpop.f32.mrb[7].mxu0  ;;  %1658 = vrot.lane.b32.xlu1 %v1960_v6, %s2269_s1 }
 0x166   :  { %1634 = vst.msk [vmem:[#allocation7 + $0xc0] sm:$0xff] %vm1627_vm1, %v825_v7  ;;  %1656 = vrot.lane.b32.xlu0 %v825_v7, %s2269_s1 }
 0x1cb   :  { %v1647_v11 = vpop.permute.xlu1 %1646 }
 0x1cc   :  { %1670 = vst.msk [vmem:[#allocation7 + $0x28] sm:$0xff] %vm1627_vm1, %v1647_v11  ;;  %v1645_v12 = vpop.permute.xlu0 %1644 }
 0x1cd   :  { %v2047_v13 = vpop.f32.mrb[0].mxu1  ;;  %1669 = vst.msk [vmem:[#allocation7 + $0x8] sm:$0xff] %vm1627_vm1, %v1645_v12 }
 0x1ce   :  { %1679 = vst.msk [vmem:[#allocation7 + $0x30] sm:$0xff] %vm1627_vm1, %v2047_v13  ;;  %v1581_v9 = vpop.f32.mrb[1].mxu1  ;;  %1696 = vrot.lane.b32.xlu1 %v2047_v13, %s2269_s1 }
 0x1cf   :  { %1678 = vst.msk [vmem:[#allocation7 + $0x10] sm:$0xff] %vm1627_vm1, %v1581_v9  ;;  %1694 = vrot.lane.b32.xlu0 %v1581_v9, %s2269_s1  ;;  %v1651_v15 = vpop.permute.xlu1 %1650 }
 0x1d0   :  { %1672 = vst.msk [vmem:[#allocation7 + $0x68] sm:$0xff] %vm1627_vm1, %v1651_v15  ;;  %v1649_v14 = vpop.permute.xlu0 %1648 }
 0x1d1   :  { %v2050_v8 = vpop.f32.mrb[2].mxu1  ;;  %1671 = vst.msk [vmem:[#allocation7 + $0x48] sm:$0xff] %vm1627_vm1, %v1649_v14 }
 0x1d2   :  { %1681 = vst.msk [vmem:[#allocation7 + $0x70] sm:$0xff] %vm1627_vm1, %v2050_v8  ;;  %v1593_v10 = vpop.f32.mrb[3].mxu1  ;;  %1700 = vrot.lane.b32.xlu1 %v2050_v8, %s2269_s1 }
 0x1d3   :  { %1680 = vst.msk [vmem:[#allocation7 + $0x50] sm:$0xff] %vm1627_vm1, %v1593_v10  ;;  %1698 = vrot.lane.b32.xlu0 %v1593_v10, %s2269_s1  ;;  %v1655_v16 = vpop.permute.xlu1 %1654 }
 0x1d4   :  { %1674 = vst.msk [vmem:[#allocation7 + $0xa8] sm:$0xff] %vm1627_vm1, %v1655_v16  ;;  %v1653_v17 = vpop.permute.xlu0 %1652 }
 0x1d5   :  { %v2053_v18 = vpop.f32.mrb[4].mxu1  ;;  %1673 = vst.msk [vmem:[#allocation7 + $0x88] sm:$0xff] %vm1627_vm1, %v1653_v17 }
 0x1d6   :  { %1683 = vst.msk [vmem:[#allocation7 + $0xb0] sm:$0xff] %vm1627_vm1, %v2053_v18  ;;  %v1605_v19 = vpop.f32.mrb[5].mxu1  ;;  %1704 = vrot.lane.b32.xlu1 %v2053_v18, %s2269_s1 }
 0x1d7   :  { %1682 = vst.msk [vmem:[#allocation7 + $0x90] sm:$0xff] %vm1627_vm1, %v1605_v19  ;;  %1702 = vrot.lane.b32.xlu0 %v1605_v19, %s2269_s1  ;;  %v1659_v20 = vpop.permute.xlu1 %1658 }
 0x1d8   :  { %1676 = vst.msk [vmem:[#allocation7 + $0xe8] sm:$0xff] %vm1627_vm1, %v1659_v20  ;;  %v1657_v21 = vpop.permute.xlu0 %1656 }
 0x1d9   :  { %v2056_v22 = vpop.f32.mrb[6].mxu1  ;;  %1675 = vst.msk [vmem:[#allocation7 + $0xc8] sm:$0xff] %vm1627_vm1, %v1657_v21 }
 0x1da   :  { %1685 = vst.msk [vmem:[#allocation7 + $0xf0] sm:$0xff] %vm1627_vm1, %v2056_v22  ;;  %v1617_v23 = vpop.f32.mrb[7].mxu1  ;;  %1708 = vrot.lane.b32.xlu1 %v2056_v22, %s2269_s1 }
 0x1db   :  { %1684 = vst.msk [vmem:[#allocation7 + $0xd0] sm:$0xff] %vm1627_vm1, %v1617_v23  ;;  %1706 = vrot.lane.b32.xlu0 %v1617_v23, %s2269_s1 }
 0x240   :  { %v1697_v24 = vpop.permute.xlu1 %1696 }
 0x241   :  { %1720 = vst.msk [vmem:[#allocation7 + $0x38] sm:$0xff] %vm1627_vm1, %v1697_v24  ;;  %v1695_v25 = vpop.permute.xlu0 %1694 }
 0x242   :  { %1719 = vst.msk [vmem:[#allocation7 + $0x18] sm:$0xff] %vm1627_vm1, %v1695_v25 }
 0x244   :  { %v1701_v26 = vpop.permute.xlu1 %1700 }
 0x245   :  { %1722 = vst.msk [vmem:[#allocation7 + $0x78] sm:$0xff] %vm1627_vm1, %v1701_v26  ;;  %v1699_v27 = vpop.permute.xlu0 %1698 }
 0x246   :  { %1721 = vst.msk [vmem:[#allocation7 + $0x58] sm:$0xff] %vm1627_vm1, %v1699_v27 }
 0x248   :  { %v1705_v28 = vpop.permute.xlu1 %1704 }
 0x249   :  { %1724 = vst.msk [vmem:[#allocation7 + $0xb8] sm:$0xff] %vm1627_vm1, %v1705_v28  ;;  %v1703_v29 = vpop.permute.xlu0 %1702 }
 0x24a   :  { %1723 = vst.msk [vmem:[#allocation7 + $0x98] sm:$0xff] %vm1627_vm1, %v1703_v29 }
 0x24c   :  { %v1709_v30 = vpop.permute.xlu1 %1708 }
 0x24d   :  { %1726 = vst.msk [vmem:[#allocation7 + $0xf8] sm:$0xff] %vm1627_vm1, %v1709_v30  ;;  %v1707_v31 = vpop.permute.xlu0 %1706 }
 0x24e   :  { %1725 = vst.msk [vmem:[#allocation7 + $0xd8] sm:$0xff] %vm1627_vm1, %v1707_v31 }
 0x24f   :  { %2247 = shalt.err (!%p2244_p6)
}
 0x250   :  { %s2248_s12 = scalar_lea.hbm %s2643_s2, 4096 }
 0x251   :  { %p2249_p7 = scmp.ne.s32.totalorder %s2643_s2, %s2248_s12  ;;  %p2252_p8 = scmp.lt.u32.totalorder %s2248_s12, %s2643_s2 }
 0x253   :  { %p2254_p9 = pnand %p2252_p8, %p2249_p7 }
 0x255   :  { %2257 = shalt.err (!%p2254_p9)
}
 0x256   :  { %1738 = dma.vmem_to_hbm [thread:$0]  %s1733_s8, 4096, %s2643_s2, [#allocation4], %s2265_s19, %s2265_s19, %s2266_s20  }
 0x257   :  { %2262 = dma.done.wait [#allocation4], 4096  }
 0x258   :  { %2263 = vsyncadd [#allocation4], 4294963200 }
 0x259   :  { %1742 = vsyncpa [#allocation3], 1 }
 0x25a   :  { %1743 = vsyncpa [#allocation6], 1 }
 0x25b   :  { %1744 = vsyncpa [#allocation4], 1 }

</bundles_post_ra>
